<compile_context>
chip_gen: v7x
topology: tpu7x:2x2x1
jax: 0.10.0
libtpu: 0.0.40
codegen_flags: <defaults>
</compile_context>

<pallas_src>
import functools

import jax
import jax.numpy as jnp
from jax.experimental import pallas as pl
from jax.experimental.pallas import tpu as pltpu


def _round_up(x, m):
    return ((x + m - 1) // m) * m


def _largest_tile(padded, max_tile, align):
    """Largest divisor of `padded` that is a multiple of `align` and <= max_tile."""
    max_tile = max(align, min(max_tile, padded))
    if padded <= max_tile:
        return padded
    best = align
    for t in range(align, max_tile + 1, align):
        if padded % t == 0:
            best = t
    return best


# ----------------------------- Pallas kernel --------------------------------
def _linear_kernel(x_ref, w_ref, b_ref, o_ref):
    # x_ref: (tm, tk) bf16   w_ref: (tk, tn) bf16   b_ref: (1, tn) f32
    # o_ref: (tm, tn) f32 -- its block index (i, j) is constant along the K
    # axis, so it stays resident in VMEM and doubles as the accumulator.
    k = pl.program_id(2)
    partial_ = jnp.dot(x_ref[...], w_ref[...],
                       preferred_element_type=jnp.float32)

    @pl.when(k == 0)
    def _init():
        o_ref[...] = partial_

    @pl.when(k > 0)
    def _accum():
        o_ref[...] += partial_

    @pl.when(k == pl.num_programs(2) - 1)
    def _bias():
        # Bias added exactly once per output tile, on the last K step.
        o_ref[...] += b_ref[...]


@functools.partial(jax.jit, static_argnames=("b_pad", "tm", "tn", "tk", "n_out"))
def _linear_pallas(x, w_t_padded, bias_padded, *, b_pad, tm, tn, tk, n_out):
    """y = x @ W^T + b with W^T pre-transposed / 128-padded / bf16 at init."""
    B, K = x.shape
    K_pad, N_pad = w_t_padded.shape
    assert b_pad % tm == 0 and N_pad % tn == 0 and K_pad % tk == 0
    assert K <= K_pad and n_out <= N_pad

    x_bf = x.astype(jnp.bfloat16)
    if (b_pad, K_pad) != (B, K):
        # Under jit the cast and the edge pad fuse; no extra full HBM pass.
        x_bf = jnp.pad(x_bf, ((0, b_pad - B), (0, K_pad - K)))

    grid = (b_pad // tm, N_pad // tn, K_pad // tk)

    flops = 2 * b_pad * K_pad * N_pad
    bytes_accessed = (b_pad * K_pad * 2 * (N_pad // tn)   # x re-read per N tile
                      + K_pad * N_pad * 2                 # weight streamed once
                      + N_pad * 4 + b_pad * N_pad * 4)

    out = pl.pallas_call(
        _linear_kernel,
        out_shape=jax.ShapeDtypeStruct((b_pad, N_pad), jnp.float32),
        grid_spec=pltpu.PrefetchScalarGridSpec(
            num_scalar_prefetch=0,
            grid=grid,
            in_specs=[
                pl.BlockSpec((tm, tk), lambda i, j, k: (i, k)),
                pl.BlockSpec((tk, tn), lambda i, j, k: (k, j)),
                pl.BlockSpec((1, tn), lambda i, j, k: (0, j)),
            ],
            out_specs=pl.BlockSpec((tm, tn), lambda i, j, k: (i, j)),
        ),
        compiler_params=pltpu.CompilerParams(
            dimension_semantics=("parallel", "parallel", "arbitrary"),
            vmem_limit_bytes=32 * 1024 * 1024,
        ),
        cost_estimate=pl.CostEstimate(
            flops=flops, bytes_accessed=bytes_accessed, transcendentals=0),
    )(x_bf, w_t_padded, bias_padded)

    return out[:B, :n_out].astype(x.dtype)


# --------------------------- inner layer -------------------------------------
class PallasLinear:
    """Concrete inner layer (stands in for eval(options['type'])(options))."""

    # Tile ceilings sized so double-buffered live tiles fit the smallest-VMEM
    # part (v7x: 64 MiB physical / 32 MiB scoped) with headroom; larger tiles
    # also cut weight/x re-reads and grid-step overhead on v5e/v6e.
    TM_MAX, TN_MAX, TK_MAX = 512, 512, 1024
    _VMEM_BUDGET = 20 * 1024 * 1024      # budget for double-buffered live tiles
    _W_COLLAPSE_BYTES = 4 * 1024 * 1024  # per-buffer weight slab limit for tn=N_pad

    def __init__(self, options):
        in_f = options["in_features"]
        out_f = options["out_features"]
        key = jax.random.PRNGKey(0)
        kw, kb = jax.random.split(key)
        # Deterministic synthetic init (shapes follow nn.Linear(in_f, out_f)).
        self.weight = jax.random.normal(kw, (out_f, in_f), jnp.float32) * 0.05
        self.bias = jax.random.normal(kb, (out_f,), jnp.float32) * 0.05
        self.in_features = in_f
        self.out_features = out_f

        # Pad K/N only to the 128-lane requirement -- not to the tile size.
        self.K_pad = _round_up(in_f, 128)
        self.N_pad = _round_up(out_f, 128)

        self.tm_max = max(16, min(options.get("tm", self.TM_MAX), self.TM_MAX))
        self._tn_override = options.get("tn", None)
        tk_max = max(128, min(options.get("tk", self.TK_MAX), self.TK_MAX))
        self.tk = _largest_tile(self.K_pad, tk_max, 128)

        # Transpose + pad + bf16-cast ONCE at init, not on every forward.
        # TODO(synk): per-output-channel int8 (v5e/v6e) / fp8 (v7x) weight
        # quantization would halve the weight HBM stream but changes numerics;
        # kept bf16 here.
        w_t = jnp.pad(self.weight.T.astype(jnp.bfloat16),
                      ((0, self.K_pad - in_f), (0, self.N_pad - out_f)))
        b2d = jnp.pad(self.bias, (0, self.N_pad - out_f)).reshape(1, self.N_pad)
        self.w_t_padded = jax.block_until_ready(w_t)
        self.bias_padded = jax.block_until_ready(b2d.astype(jnp.float32))

    def _select_tiles(self, batch):
        K_pad, N_pad, tk = self.K_pad, self.N_pad, self.tk

        # N tile: collapse to N_pad when the per-K-step weight slab is small ->
        # contiguous weight DMAs, x read exactly once, fewer grid steps.
        if self._tn_override is not None:
            tn = _largest_tile(
                N_pad, max(128, min(self._tn_override, self.TN_MAX)), 128)
        elif tk * N_pad * 2 <= self._W_COLLAPSE_BYTES:
            tn = N_pad
        else:
            tn = _largest_tile(N_pad, self.TN_MAX, 128)

        # M: pad the batch only to the bf16 sublane multiple (16), then pick the
        # largest divisor tile under the VMEM budget (no rounding B up to tm).
        b_pad = _round_up(max(batch, 1), 16)
        w_db = 2 * tk * tn * 2                 # weight tile, double-buffered
        per_row = 4 * tk + 8 * tn              # x (bf16 x2) + out (f32 x2) per row
        tm_cap = max(16, ((self._VMEM_BUDGET - w_db) // per_row) // 16 * 16)
        tm = _largest_tile(b_pad, min(self.tm_max, tm_cap), 16)

        # Keep >=2 blocks on a parallel axis when the whole batch fits one M
        # tile, so the second TensorCore (v7x) has work (x re-read negligible).
        if (b_pad // tm == 1 and tn == N_pad and N_pad >= 256
                and self._tn_override is None):
            tn = _largest_tile(N_pad, N_pad // 2, 128)

        return b_pad, tm, tn, tk

    def __call__(self, x):
        b_pad, tm, tn, tk = self._select_tiles(x.shape[0])
        return _linear_pallas(x, self.w_t_padded, self.bias_padded,
                              b_pad=b_pad, tm=tm, tn=tn, tk=tk,
                              n_out=self.out_features)


# --------------------------- TreeNode wrapper ---------------------------------
class TreeNode:
    """Mirror of the PyTorch TreeNode: forward delegates to the inner layer."""

    # TODO(synk): the original uses `eval(self.type)` for fully dynamic dispatch
    # over arbitrary layer classes; here we use a static registry.
    _REGISTRY = {"PallasLinear": PallasLinear}

    def __init__(self, options):
        self.type = options["type"]
        self.layer = self._REGISTRY[self.type](options)

    def __call__(self, *argv, **kwargs):
        return self.layer(*argv, **kwargs)


# --------------------------------- main ---------------------------------------
if __name__ == "__main__":
    def ref_fn(x, layer):
        # Reference at the same precision as the kernel: bf16 operands,
        # f32 accumulation, f32 bias add.
        xb = x.astype(jnp.bfloat16)
        wb = layer.weight.astype(jnp.bfloat16)
        return jnp.dot(xb, wb.T, preferred_element_type=jnp.float32) + layer.bias

    # Case 1: toy shapes consistent with the original example (batch=8, hidden=32).
    options = {"type": "PallasLinear", "in_features": 32, "out_features": 32}
    node = TreeNode(options)
    x = jax.random.normal(jax.random.PRNGKey(0), (8, 32), jnp.float32)
    y = jax.block_until_ready(node(x))
    ref = ref_fn(x, node.layer)
    assert y.shape == ref.shape
    assert jnp.allclose(y, ref, atol=1e-3, rtol=1e-3), "case-1 mismatch"

    # Case 2: forces a real multi-tile (M, N, K) grid via small tile overrides.
    options2 = {"type": "PallasLinear", "in_features": 256, "out_features": 384,
                "tm": 32, "tn": 128, "tk": 128}
    node2 = TreeNode(options2)
    x2 = jax.random.normal(jax.random.PRNGKey(1), (64, 256), jnp.float32)
    y2 = jax.block_until_ready(node2(x2))
    ref2 = ref_fn(x2, node2.layer)
    assert y2.shape == ref2.shape
    assert jnp.allclose(y2, ref2, atol=2e-3, rtol=2e-3), "case-2 mismatch"

    # Case 3: default tiles, non-128-multiple K/N and awkward batch — exercises
    # 128-only padding, divisor-based tm and the small-batch N split.
    options3 = {"type": "PallasLinear", "in_features": 200, "out_features": 300}
    node3 = TreeNode(options3)
    x3 = jax.random.normal(jax.random.PRNGKey(2), (24, 200), jnp.float32)
    y3 = jax.block_until_ready(node3(x3))
    ref3 = ref_fn(x3, node3.layer)
    assert y3.shape == ref3.shape
    assert jnp.allclose(y3, ref3, atol=2e-3, rtol=2e-3), "case-3 mismatch"

    print("KERNEL_OK")
</pallas_src>

<mosaic_0001>
module attributes {stable_mosaic.version = 11 : i64} {
  func.func @_linear_kernel(%arg0: i32, %arg1: i32, %arg2: i32, %arg3: memref<16x128xbf16, #tpu.memory_space<vmem>>, %arg4: memref<128x128xbf16, #tpu.memory_space<vmem>>, %arg5: memref<1x128xf32, #tpu.memory_space<vmem>>, %arg6: memref<16x128xf32, #tpu.memory_space<vmem>>) attributes {dimension_semantics = [#tpu.dimension_semantics<parallel>, #tpu.dimension_semantics<parallel>, #tpu.dimension_semantics<arbitrary>], iteration_bounds = array<i64: 1, 1, 1>, scalar_prefetch = 0 : i64, scratch_operands = 0 : i64, tpu.core_type = #tpu.core_type<tc>, window_params = [{transform_indices = @transform_0, window_bounds = array<i64: 16, 128>}, {transform_indices = @transform_1, window_bounds = array<i64: 128, 128>}, {transform_indices = @transform_2, window_bounds = array<i64: 1, 128>}, {transform_indices = @transform_3, window_bounds = array<i64: 16, 128>}]} {
    %c0 = arith.constant 0 : index
    %c0_0 = arith.constant 0 : index
    %0 = vector.load %arg3[%c0, %c0_0] : memref<16x128xbf16, #tpu.memory_space<vmem>>, vector<16x128xbf16>
    %c0_1 = arith.constant 0 : index
    %c0_2 = arith.constant 0 : index
    %1 = vector.load %arg4[%c0_1, %c0_2] : memref<128x128xbf16, #tpu.memory_space<vmem>>, vector<128x128xbf16>
    %cst = arith.constant dense<0.000000e+00> : vector<16x128xf32>
    %2 = tpu.matmul %0, %1, %cst {dimension_numbers = #tpu.dot_dimension_numbers<[1], [0], [0], [1], [0, 0, 1, 1], [], []>} : vector<16x128xbf16>, vector<128x128xbf16>, vector<16x128xf32> -> vector<16x128xf32>
    %c0_i32 = arith.constant 0 : i32
    %3 = arith.cmpi eq, %arg2, %c0_i32 : i32
    %4 = arith.extui %3 : i1 to i32
    %c0_i32_3 = arith.constant 0 : i32
    %5 = arith.cmpi ne, %4, %c0_i32_3 : i32
    scf.if %5 {
      %c0_8 = arith.constant 0 : index
      %c0_9 = arith.constant 0 : index
      %12 = vector.load %arg6[%c0_8, %c0_9] : memref<16x128xf32, #tpu.memory_space<vmem>>, vector<16x128xf32>
      tpu.vector_store %arg6[%c0_8, %c0_9], %2 {strides = array<i32>} : memref<16x128xf32, #tpu.memory_space<vmem>>, vector<16x128xf32>,
    } else {
    }
    %c0_i32_4 = arith.constant 0 : i32
    %6 = arith.cmpi sgt, %arg2, %c0_i32_4 : i32
    %7 = arith.extui %6 : i1 to i32
    %c0_i32_5 = arith.constant 0 : i32
    %8 = arith.cmpi ne, %7, %c0_i32_5 : i32
    scf.if %8 {
      %c0_8 = arith.constant 0 : index
      %c0_9 = arith.constant 0 : index
      %12 = vector.load %arg6[%c0_8, %c0_9] : memref<16x128xf32, #tpu.memory_space<vmem>>, vector<16x128xf32>
      %13 = arith.addf %12, %2 : vector<16x128xf32>
      %c0_10 = arith.constant 0 : index
      %c0_11 = arith.constant 0 : index
      %14 = vector.load %arg6[%c0_10, %c0_11] : memref<16x128xf32, #tpu.memory_space<vmem>>, vector<16x128xf32>
      tpu.vector_store %arg6[%c0_10, %c0_11], %13 {strides = array<i32>} : memref<16x128xf32, #tpu.memory_space<vmem>>, vector<16x128xf32>,
    } else {
    }
    %c0_i32_6 = arith.constant 0 : i32
    %9 = arith.cmpi eq, %arg2, %c0_i32_6 : i32
    %10 = arith.extui %9 : i1 to i32
    %c0_i32_7 = arith.constant 0 : i32
    %11 = arith.cmpi ne, %10, %c0_i32_7 : i32
    scf.if %11 {
      %c0_8 = arith.constant 0 : index
      %c0_9 = arith.constant 0 : index
      %12 = vector.load %arg6[%c0_8, %c0_9] : memref<16x128xf32, #tpu.memory_space<vmem>>, vector<16x128xf32>
      %c0_10 = arith.constant 0 : index
      %c0_11 = arith.constant 0 : index
      %13 = vector.load %arg5[%c0_10, %c0_11] : memref<1x128xf32, #tpu.memory_space<vmem>>, vector<1x128xf32>
      %14 = vector.broadcast %13 : vector<1x128xf32> to vector<16x128xf32>
      %15 = arith.addf %12, %14 : vector<16x128xf32>
      %c0_12 = arith.constant 0 : index
      %c0_13 = arith.constant 0 : index
      %16 = vector.load %arg6[%c0_12, %c0_13] : memref<16x128xf32, #tpu.memory_space<vmem>>, vector<16x128xf32>
      tpu.vector_store %arg6[%c0_12, %c0_13], %15 {strides = array<i32>} : memref<16x128xf32, #tpu.memory_space<vmem>>, vector<16x128xf32>,
    } else {
    }
    return
  }
  func.func @transform_0(%arg0: i32, %arg1: i32, %arg2: i32) -> (i32, i32) {
    %c0_i32 = arith.constant 0 : i32
    return %arg0, %arg2 : i32, i32
  }
  func.func @transform_1(%arg0: i32, %arg1: i32, %arg2: i32) -> (i32, i32) {
    %c0_i32 = arith.constant 0 : i32
    return %arg2, %arg1 : i32, i32
  }
  func.func @transform_2(%arg0: i32, %arg1: i32, %arg2: i32) -> (i32, i32) {
    %c0_i32 = arith.constant 0 : i32
    %c0_i32_0 = arith.constant 0 : i32
    return %c0_i32, %arg1 : i32, i32
  }
  func.func @transform_3(%arg0: i32, %arg1: i32, %arg2: i32) -> (i32, i32) {
    %c0_i32 = arith.constant 0 : i32
    return %arg0, %arg1 : i32, i32
  }
}

</mosaic_0001>

<bundles_post_ra>
// kernel: _linear_pallas.1
= control target key start
LH: loop header
LB: loop body
LE: loop exit
PB: predicated region body
PF: predicated region fallthrough
CT: control target
= control target key end

     0   :  { %8 = vsyncpa [#allocation3], 0  ;;  %s256_s12 = smov [#allocation2]   ;;  %s305_s0 = inlined_call_operand.vmem [shape: bf16[16,128], index: 0, kind: input, shape index: {}]   ;;  %s306_s1 = inlined_call_operand.hbm [shape: bf16[128,128], index: 1, kind: input, shape index: {}]   ;;  %s307_s2 = inlined_call_operand.vmem [shape: f32[1,128], index: 2, kind: input, shape index: {}]   ;;  %s308_s3 = inlined_call_operand.vmem [shape: f32[16,128], index: 3, kind: output, shape index: {}]  }
   0x1   :  { %s16_s13 = sshll.u32 %s256_s12, 4  ;;  %s232_s16 = scalar_lea.hbm %s306_s1, 1024  ;;  %s17_s13 = int_to_ptr.vmem [resolvable:$true] %s16_s13 }
   0x2   :  { %p233_p0 = scmp.ne.s32.totalorder %s306_s1, %s232_s16  ;;  %p236_p1 = scmp.lt.u32.totalorder %s232_s16, %s306_s1 }
   0x4   :  { %p238_p2 = pnand %p236_p1, %p233_p0 }
   0x6   :  { %241 = shalt.err (!%p238_p2)
}
   0x7   :  { %s242_s21 = scalar_lea.vmem %s17_s13, 1024  ;;  %p247_p4 = scmp.lt.s32.totalorder %s17_s13, %s17_s13 }
   0x8   :  { %p243_p3 = scmp.ne.s32.totalorder %s17_s13, %s242_s21  ;;  %p248_p5 = scmp.lt.s32.totalorder %s242_s21, %s242_s21 }
   0xa   :  { %p249_p6 = por %p248_p5, %p247_p4 }
   0xc   :  { %p250_p7 = pnand %p249_p6, %p243_p3 }
   0xe   :  { %253 = shalt.err (!%p250_p7)
}
   0xf   :  { %s257_s22 = smov 64   ;;  %s258_s23 = smov 4  }
  0x10   :  { %22 = dma.hbm_to_vmem [thread:$0]  %s306_s1, 1024, %s17_s13, [#allocation3], %s257_s22, %s257_s22, %s258_s23  }
  0x11   :  { %254 = dma.done.wait [#allocation3], 1024  }
  0x12   :  { %255 = vsyncadd [#allocation3], 4294966272  ;;  %v259_v0 = vmov 0.0   ;;  %vm260_vm0 = vmmov 0   ;;  %v223_v1 = vld [vmem:[#allocation2] sm:$0xff]   ;;  %v224_v2 = vld [vmem:[#allocation2 + $0x8] sm:$0xff]  }
  0x13   :  { %198 = vmatprep.subr.bf16.mxu0 %v259_v0  ;;  %214 = vmatprep.mubr.msk.bf16.mxu0 %vm260_vm0, %v259_v0  ;;  %v225_v3 = vld [vmem:[#allocation2 + $0x10] sm:$0xff]   ;;  %v226_v4 = vld [vmem:[#allocation2 + $0x18] sm:$0xff]   ;;  %v227_v5 = vld [vmem:[#allocation2 + $0x20] sm:$0xff]  }
  0x14   :  { %199 = vmatpush3.bf16.msra.mxu0 %v223_v1  ;;  %v228_v6 = vld [vmem:[#allocation2 + $0x28] sm:$0xff]   ;;  %v229_v7 = vld [vmem:[#allocation2 + $0x30] sm:$0xff]   ;;  %v230_v8 = vld [vmem:[#allocation2 + $0x38] sm:$0xff]  }
  0x15   :  { %200 = vmatprep.subr.bf16.mxu0 %v259_v0  ;;  %v231_v9 = vld [vmem:[%s305_s0] sm:$0xff]  }
  0x16   :  { %v188_v10 = vld [vmem:[%s307_s2] ss:$0 sm:$0xff] }
  0x18   :  { %201 = vmatpush3.bf16.msra.mxu0 %v224_v2 }
  0x19   :  { %202 = vmatprep.subr.bf16.mxu0 %v259_v0 }
  0x1c   :  { %203 = vmatpush3.bf16.msra.mxu0 %v225_v3 }
  0x1d   :  { %204 = vmatprep.subr.bf16.mxu0 %v259_v0 }
  0x20   :  { %205 = vmatpush3.bf16.msra.mxu0 %v226_v4 }
  0x21   :  { %206 = vmatprep.subr.bf16.mxu0 %v259_v0 }
  0x24   :  { %207 = vmatpush3.bf16.msra.mxu0 %v227_v5 }
  0x25   :  { %208 = vmatprep.subr.bf16.mxu0 %v259_v0 }
  0x28   :  { %209 = vmatpush3.bf16.msra.mxu0 %v228_v6 }
  0x29   :  { %210 = vmatprep.subr.bf16.mxu0 %v259_v0 }
  0x2c   :  { %211 = vmatpush3.bf16.msra.mxu0 %v229_v7 }
  0x2d   :  { %212 = vmatprep.subr.bf16.mxu0 %v259_v0 }
  0x30   :  { %213 = vmatpush3.bf16.msra.mxu0 %v230_v8 }
  0x33   :  { %215 = vmatmul.mubr.bf16.vlgmr.msra.gmra.mrb[0].mxu0 %v231_v9 }
 0x106   :  { %v135_v11 = vpop.f32.mrb[0].mxu0 }
 0x107   :  { %v170_v12 = vadd.f32 %v188_v10, %v135_v11  ;;  %v216_v13 = vpop.f32.mrb[1].mxu0 }
 0x108   :  { %v138_v14 = vpop.f32.mrb[2].mxu0 }
 0x109   :  { %172 = vst [vmem:[%s308_s3] sm:$0xff] %v170_v12  ;;  %v171_v15 = vadd.f32 %v188_v10, %v138_v14  ;;  %v217_v16 = vpop.f32.mrb[3].mxu0 }
 0x10b   :  { %173 = vst [vmem:[%s308_s3 + $0x8] sm:$0xff] %v171_v15 }
 0x10c   :  { %178 = vsyncpa [#allocation3], 1 }

</bundles_post_ra>
